<compile_context>
chip_gen: v7x
topology: tpu7x:2x2x1
jax: 0.10.0
libtpu: 0.0.40
codegen_flags: <defaults>
</compile_context>

<pallas_src>
import jax
import jax.numpy as jnp
from jax import lax
from jax.experimental import pallas as pl
from jax.experimental.pallas import tpu as pltpu

DIM = [10, 10, 10, 20, 2]  # ThreeLayerFCN uses dim[0], dim[1], dim[2]

# (TB, 10)/(TB, 2) f32 blocks lane-pad to TB x 128, so double-buffered x + out
# blocks cost 4 * TB * 128 * 4 B = TB * 2 KiB of VMEM.  TB = 4096 -> ~8 MiB:
# safely under v5e's 16 MiB default scoped VMEM (and far under v6e/v7x), while
# amortizing the ~0.35 us per-grid-step overhead.
_TB_MAX = 4096
_SINGLE_TILE_MAX = 1024     # below this, one full-array block (grid = 1)
_XLA_FALLBACK_MAX = 512     # below this, skip Pallas entirely unless forced


def _round_up(n, m):
    return ((n + m - 1) // m) * m


def fcn_kernel(x_ref, w1t_ref, b1_ref, w2t_ref, b2_ref, o_ref):
    """One batch tile: Linear(10->10) + ReLU + Linear(10->2) + softmax(dim=1)."""
    x = x_ref[...]
    # Weights pre-transposed in the wrapper to (in, out): plain row-major MXU
    # matmuls, no in-kernel transpose/relayout.
    h = jnp.dot(x, w1t_ref[...], preferred_element_type=jnp.float32) + b1_ref[...]
    h = jnp.maximum(h, 0.0)
    z = jnp.dot(h, w2t_ref[...], preferred_element_type=jnp.float32) + b2_ref[...]

    if o_ref.shape[-1] == 2:
        # 2-class closed form: softmax([z0, z1]) == [sig(z0-z1), 1-sig(z0-z1)].
        # One EUP exp per row; rows sum to exactly 1 by construction.
        diff = z[:, 0:1] - z[:, 1:2]                        # (TB, 1)
        p0 = 1.0 / (1.0 + jnp.exp(-diff))                   # (TB, 1)
        col = lax.broadcasted_iota(jnp.int32, z.shape, 1)   # (TB, 2)
        o_ref[...] = jnp.where(col == 0, p0, 1.0 - p0)
    else:
        # Generic numerically-stable softmax (not traced when d_out == 2).
        z = z - jnp.max(z, axis=1, keepdims=True)
        e = jnp.exp(z)
        o_ref[...] = e * pl.reciprocal(jnp.sum(e, axis=1, keepdims=True), approx=False)


def _fused_xla(x, w1t, b1, w2t, b2):
    h = jnp.maximum(x @ w1t + b1, 0.0)
    return jax.nn.softmax(h @ w2t + b2, axis=1)


def three_layer_fcn(x, w1, b1, w2, b2, *, force_pallas=False):
    """ThreeLayerFCN forward.  Weights use PyTorch Linear layout: (out, in)."""
    # Match the PyTorch module's 1-D input handling: treat as one row.
    if x.ndim == 1:
        x = x[None, :]
    x = x.astype(jnp.float32)

    # Pre-transpose the (tiny, ~400 B) weights once in the wrapper -> (in, out)
    # and make biases 2-D so every kernel operand is a 2-D lane-major tile.
    w1t = jnp.asarray(w1, jnp.float32).T            # (d0, d1)
    w2t = jnp.asarray(w2, jnp.float32).T            # (d1, d2)
    b1r = jnp.asarray(b1, jnp.float32).reshape(1, -1)
    b2r = jnp.asarray(b2, jnp.float32).reshape(1, -1)

    B, d0 = x.shape
    d1 = w1t.shape[1]
    d_out = w2t.shape[1]

    # At tiny batches the pallas_call launch + one grid step is pure overhead;
    # let XLA fuse the three ops (identical numerics) unless forced.
    if B <= _XLA_FALLBACK_MAX and not force_pallas:
        return _fused_xla(x, w1t, b1r, w2t, b2r)

    # Batch tiling.
    if B <= _SINGLE_TILE_MAX:
        TB = B                                      # full-array block: always legal
    else:
        # Even number of tiles so v7x's two TensorCores both get work via the
        # "parallel" grid axis; each tile <= _TB_MAX rows, multiple of 8.
        n_tiles = max(2, 2 * pl.cdiv(pl.cdiv(B, _TB_MAX), 2))
        TB = _round_up(pl.cdiv(B, n_tiles), 8)
    grid = (pl.cdiv(B, TB),)

    # Weights/biases replicate (same block every step -> stay VMEM-resident);
    # only x and out stream through HBM.
    rep = lambda a: pl.BlockSpec(a.shape, lambda i: (0, 0))

    param_bytes = sum(int(a.size) * 4 for a in (w1t, b1r, w2t, b2r))
    cost = pl.CostEstimate(
        flops=2 * B * (d0 * d1 + d1 * d_out),
        transcendentals=B * (1 if d_out == 2 else d_out),
        bytes_accessed=B * (d0 + d_out) * 4 + param_bytes,
    )

    # Perf note: a feature-major [F, B] layout would give lane-dense tiles
    # (avoiding the 10/128 and 2/128 lane-sparse padding + masked stores);
    # kept batch-major here to preserve the module's [B, F] interface.
    return pl.pallas_call(
        fcn_kernel,
        out_shape=jax.ShapeDtypeStruct((B, d_out), jnp.float32),
        grid=grid,
        in_specs=[
            pl.BlockSpec((TB, d0), lambda i: (i, 0)),
            rep(w1t), rep(b1r), rep(w2t), rep(b2r),
        ],
        out_specs=pl.BlockSpec((TB, d_out), lambda i: (i, 0)),
        compiler_params=pltpu.CompilerParams(
            dimension_semantics=("parallel",),  # shard batch tiles over TCs (v7x)
        ),
        cost_estimate=cost,
    )(x, w1t, b1r, w2t, b2r)


def _reference(x, w1, b1, w2, b2):
    if x.ndim == 1:
        x = x[None, :]
    h = jnp.maximum(x @ w1.T + b1, 0.0)
    return jax.nn.softmax(h @ w2.T + b2, axis=1)


if __name__ == "__main__":
    key = jax.random.PRNGKey(0)
    k_x, k_w1, k_b1, k_w2, k_b2, k_xl = jax.random.split(key, 6)

    d0, d1, d2 = DIM[0], DIM[1], DIM[2]

    # Deterministic synthetic parameters (PyTorch Linear layout: (out, in)).
    w1 = jax.random.normal(k_w1, (d1, d0), dtype=jnp.float32) * 0.1
    b1 = jax.random.normal(k_b1, (d1,), dtype=jnp.float32) * 0.1
    w2 = jax.random.normal(k_w2, (d2, d1), dtype=jnp.float32) * 0.1
    b2 = jax.random.normal(k_b2, (d2,), dtype=jnp.float32) * 0.1

    # Small-batch path through the Pallas kernel (grid = 1, full-array block).
    B = 8
    x = jax.random.normal(k_x, (B, d0), dtype=jnp.float32)
    out = jax.block_until_ready(three_layer_fcn(x, w1, b1, w2, b2, force_pallas=True))
    ref = _reference(x, w1, b1, w2, b2)
    assert jnp.allclose(out, ref, atol=1e-5, rtol=1e-5), "mismatch vs reference (B=8)"
    assert jnp.allclose(jnp.sum(out, axis=1), 1.0, atol=1e-5), "rows must sum to 1 (B=8)"

    # Default dispatch for small batches (fused XLA fallback) stays correct.
    out_fb = jax.block_until_ready(three_layer_fcn(x, w1, b1, w2, b2))
    assert jnp.allclose(out_fb, ref, atol=1e-5, rtol=1e-5), "mismatch vs reference (fallback)"

    # Tiled path: grid = 2 ("parallel" over both TCs on v7x), ragged last tile.
    BL = 2060
    xl = jax.random.normal(k_xl, (BL, d0), dtype=jnp.float32)
    out_l = jax.block_until_ready(three_layer_fcn(xl, w1, b1, w2, b2))
    ref_l = _reference(xl, w1, b1, w2, b2)
    assert jnp.allclose(out_l, ref_l, atol=1e-5, rtol=1e-5), "mismatch vs reference (B=2060)"
    assert jnp.allclose(jnp.sum(out_l, axis=1), 1.0, atol=1e-5), "rows must sum to 1 (B=2060)"

    print("KERNEL_OK")
</pallas_src>

<mosaic_0001>
module attributes {stable_mosaic.version = 11 : i64} {
  func.func @fcn_kernel(%arg0: i32, %arg1: memref<8x10xf32, #tpu.memory_space<vmem>>, %arg2: memref<10x10xf32, #tpu.memory_space<vmem>>, %arg3: memref<1x10xf32, #tpu.memory_space<vmem>>, %arg4: memref<10x10xf32, #tpu.memory_space<vmem>>, %arg5: memref<1x10xf32, #tpu.memory_space<vmem>>, %arg6: memref<8x10xf32, #tpu.memory_space<vmem>>) attributes {dimension_semantics = [#tpu.dimension_semantics<parallel>], iteration_bounds = array<i64: 1>, scalar_prefetch = 0 : i64, scratch_operands = 0 : i64, tpu.core_type = #tpu.core_type<tc>, window_params = [{transform_indices = @transform_0, window_bounds = array<i64: 8, 10>}, {pipeline_mode = #tpu.pipeline_mode<synchronous>, transform_indices = @transform_1, window_bounds = array<i64: 10, 10>}, {pipeline_mode = #tpu.pipeline_mode<synchronous>, transform_indices = @transform_2, window_bounds = array<i64: 1, 10>}, {pipeline_mode = #tpu.pipeline_mode<synchronous>, transform_indices = @transform_3, window_bounds = array<i64: 10, 10>}, {pipeline_mode = #tpu.pipeline_mode<synchronous>, transform_indices = @transform_4, window_bounds = array<i64: 1, 10>}, {transform_indices = @transform_5, window_bounds = array<i64: 8, 10>}]} {
    %c0 = arith.constant 0 : index
    %c0_0 = arith.constant 0 : index
    %0 = vector.load %arg1[%c0, %c0_0] : memref<8x10xf32, #tpu.memory_space<vmem>>, vector<8x10xf32>
    %c0_1 = arith.constant 0 : index
    %c0_2 = arith.constant 0 : index
    %1 = vector.load %arg2[%c0_1, %c0_2] : memref<10x10xf32, #tpu.memory_space<vmem>>, vector<10x10xf32>
    %cst = arith.constant dense<0.000000e+00> : vector<8x10xf32>
    %2 = tpu.matmul %0, %1, %cst {dimension_numbers = #tpu.dot_dimension_numbers<[1], [0], [0], [1], [0, 0, 1, 1], [], []>} : vector<8x10xf32>, vector<10x10xf32>, vector<8x10xf32> -> vector<8x10xf32>
    %c0_3 = arith.constant 0 : index
    %c0_4 = arith.constant 0 : index
    %3 = vector.load %arg3[%c0_3, %c0_4] : memref<1x10xf32, #tpu.memory_space<vmem>>, vector<1x10xf32>
    %4 = vector.broadcast %3 : vector<1x10xf32> to vector<8x10xf32>
    %5 = arith.addf %2, %4 : vector<8x10xf32>
    %cst_5 = arith.constant 0.000000e+00 : f32
    %6 = vector.broadcast %cst_5 : f32 to vector<8x10xf32>
    %7 = arith.maximumf %5, %6 : vector<8x10xf32>
    %c0_6 = arith.constant 0 : index
    %c0_7 = arith.constant 0 : index
    %8 = vector.load %arg4[%c0_6, %c0_7] : memref<10x10xf32, #tpu.memory_space<vmem>>, vector<10x10xf32>
    %cst_8 = arith.constant dense<0.000000e+00> : vector<8x10xf32>
    %9 = tpu.matmul %7, %8, %cst_8 {dimension_numbers = #tpu.dot_dimension_numbers<[1], [0], [0], [1], [0, 0, 1, 1], [], []>} : vector<8x10xf32>, vector<10x10xf32>, vector<8x10xf32> -> vector<8x10xf32>
    %c0_9 = arith.constant 0 : index
    %c0_10 = arith.constant 0 : index
    %10 = vector.load %arg5[%c0_9, %c0_10] : memref<1x10xf32, #tpu.memory_space<vmem>>, vector<1x10xf32>
    %11 = vector.broadcast %10 : vector<1x10xf32> to vector<8x10xf32>
    %12 = arith.addf %9, %11 : vector<8x10xf32>
    %cst_11 = arith.constant dense<0xFF800000> : vector<8xf32>
    %13 = vector.multi_reduction <maximumf>, %12, %cst_11 [1] : vector<8x10xf32> to vector<8xf32>
    %14 = vector.shape_cast %13 : vector<8xf32> to vector<8x1xf32>
    %15 = vector.broadcast %14 : vector<8x1xf32> to vector<8x10xf32>
    %16 = arith.subf %12, %15 : vector<8x10xf32>
    %17 = math.exp %16 : vector<8x10xf32>
    %cst_12 = arith.constant dense<0.000000e+00> : vector<8xf32>
    %18 = vector.multi_reduction <add>, %17, %cst_12 [1] : vector<8x10xf32> to vector<8xf32>
    %19 = vector.shape_cast %18 : vector<8xf32> to vector<8x1xf32>
    %20 = tpu.reciprocal %19 : vector<8x1xf32> -> vector<8x1xf32>
    %21 = vector.broadcast %20 : vector<8x1xf32> to vector<8x10xf32>
    %22 = arith.mulf %17, %21 : vector<8x10xf32>
    %c0_13 = arith.constant 0 : index
    %c0_14 = arith.constant 0 : index
    %23 = vector.load %arg6[%c0_13, %c0_14] : memref<8x10xf32, #tpu.memory_space<vmem>>, vector<8x10xf32>
    tpu.vector_store %arg6[%c0_13, %c0_14], %22 {strides = array<i32>} : memref<8x10xf32, #tpu.memory_space<vmem>>, vector<8x10xf32>,
    return
  }
  func.func @transform_0(%arg0: i32) -> (i32, i32) {
    %c0_i32 = arith.constant 0 : i32
    %c0_i32_0 = arith.constant 0 : i32
    return %arg0, %c0_i32 : i32, i32
  }
  func.func @transform_1(%arg0: i32) -> (i32, i32) {
    %c0_i32 = arith.constant 0 : i32
    %c0_i32_0 = arith.constant 0 : i32
    %c0_i32_1 = arith.constant 0 : i32
    return %c0_i32, %c0_i32_0 : i32, i32
  }
  func.func @transform_2(%arg0: i32) -> (i32, i32) {
    %c0_i32 = arith.constant 0 : i32
    %c0_i32_0 = arith.constant 0 : i32
    %c0_i32_1 = arith.constant 0 : i32
    return %c0_i32, %c0_i32_0 : i32, i32
  }
  func.func @transform_3(%arg0: i32) -> (i32, i32) {
    %c0_i32 = arith.constant 0 : i32
    %c0_i32_0 = arith.constant 0 : i32
    %c0_i32_1 = arith.constant 0 : i32
    return %c0_i32, %c0_i32_0 : i32, i32
  }
  func.func @transform_4(%arg0: i32) -> (i32, i32) {
    %c0_i32 = arith.constant 0 : i32
    %c0_i32_0 = arith.constant 0 : i32
    %c0_i32_1 = arith.constant 0 : i32
    return %c0_i32, %c0_i32_0 : i32, i32
  }
  func.func @transform_5(%arg0: i32) -> (i32, i32) {
    %c0_i32 = arith.constant 0 : i32
    %c0_i32_0 = arith.constant 0 : i32
    return %arg0, %c0_i32 : i32, i32
  }
}

</mosaic_0001>

<bundles_post_ra>
// kernel: tpu_custom_call.1
= control target key start
LH: loop header
LB: loop body
LE: loop exit
PB: predicated region body
PF: predicated region fallthrough
CT: control target
= control target key end

     0   :  { %10 = vsyncpa [#allocation3], 0  ;;  %s509_s0 = inlined_call_operand.hbm [shape: f32[8,10], index: 0, kind: input, shape index: {}]   ;;  %s510_s1 = inlined_call_operand.hbm [shape: f32[10,10], index: 1, kind: input, shape index: {}]   ;;  %s511_s2 = inlined_call_operand.vmem [shape: f32[1,10], index: 2, kind: input, shape index: {}]   ;;  %s512_s3 = inlined_call_operand.hbm [shape: f32[10,10], index: 3, kind: input, shape index: {}]   ;;  %s513_s4 = inlined_call_operand.vmem [shape: f32[1,10], index: 4, kind: input, shape index: {}]   ;;  %s514_s5 = inlined_call_operand.hbm [shape: f32[8,10], index: 5, kind: output, shape index: {}]  }
   0x1   :  { %11 = vsyncpa [#allocation6], 0 }
   0x2   :  { %12 = vsyncpa [#allocation4], 0  ;;  %s404_s18 = smov [#allocation5]   ;;  %s310_s22 = scalar_lea.hbm %s510_s1, 256 }
   0x3   :  { %s28_s19 = sshll.u32 %s404_s18, 4  ;;  %p311_p0 = scmp.ne.s32.totalorder %s510_s1, %s310_s22  ;;  %s29_s19 = int_to_ptr.vmem [resolvable:$true] %s28_s19 }
   0x4   :  { %p314_p1 = scmp.lt.u32.totalorder %s310_s22, %s510_s1 }
   0x6   :  { %p316_p2 = pnand %p314_p1, %p311_p0 }
   0x8   :  { %319 = shalt.err (!%p316_p2)
}
   0x9   :  { %s320_s27 = scalar_lea.vmem %s29_s19, 256  ;;  %p325_p4 = scmp.lt.s32.totalorder %s29_s19, %s29_s19 }
   0xa   :  { %p321_p3 = scmp.ne.s32.totalorder %s29_s19, %s320_s27  ;;  %p326_p5 = scmp.lt.s32.totalorder %s320_s27, %s320_s27 }
   0xc   :  { %p327_p6 = por %p326_p5, %p325_p4 }
   0xe   :  { %p328_p7 = pnand %p327_p6, %p321_p3 }
  0x10   :  { %331 = shalt.err (!%p328_p7)
}
  0x11   :  { %s405_s28 = smov 128   ;;  %s406_s29 = smov 8  }
  0x12   :  { %34 = dma.hbm_to_vmem [thread:$0]  %s510_s1, 256, %s29_s19, [#allocation6], %s405_s28, %s405_s28, %s406_s29  }
  0x13   :  { %s407_s7 = smov [#allocation2]   ;;  %s408_s9 = smov [#allocation7]  }
  0x14   :  { %s19_s8 = sshll.u32 %s407_s7, 4  ;;  %s42_s10 = sshll.u32 %s408_s9, 4  ;;  %s20_s8 = int_to_ptr.vmem [resolvable:$true] %s19_s8  ;;  %s43_s10 = int_to_ptr.vmem [resolvable:$true] %s42_s10 }
  0x15   :  { %s332_s13 = scalar_lea.hbm %s509_s0, 128 }
  0x16   :  { %p333_p8 = scmp.ne.s32.totalorder %s509_s0, %s332_s13  ;;  %p336_p9 = scmp.lt.u32.totalorder %s332_s13, %s509_s0 }
  0x18   :  { %p338_p10 = pnand %p336_p9, %p333_p8 }
  0x1a   :  { %341 = shalt.err (!%p338_p10)
}
  0x1b   :  { %s342_s1 = scalar_lea.vmem %s20_s8, 128  ;;  %p347_p12 = scmp.lt.s32.totalorder %s20_s8, %s20_s8 }
  0x1c   :  { %p343_p11 = scmp.ne.s32.totalorder %s20_s8, %s342_s1  ;;  %p348_p13 = scmp.lt.s32.totalorder %s342_s1, %s342_s1 }
  0x1e   :  { %p349_p0 = por %p348_p13, %p347_p12 }
  0x20   :  { %p350_p1 = pnand %p349_p0, %p343_p11 }
  0x22   :  { %353 = shalt.err (!%p350_p1)
}
  0x23   :  { %22 = dma.hbm_to_vmem [thread:$0]  %s509_s0, 128, %s20_s8, [#allocation3]  }
  0x24   :  { %s354_s22 = scalar_lea.hbm %s512_s3, 256 }
  0x25   :  { %p355_p2 = scmp.ne.s32.totalorder %s512_s3, %s354_s22  ;;  %p358_p3 = scmp.lt.u32.totalorder %s354_s22, %s512_s3 }
  0x27   :  { %p360_p4 = pnand %p358_p3, %p355_p2 }
  0x29   :  { %363 = shalt.err (!%p360_p4)
}
  0x2a   :  { %s364_s27 = scalar_lea.vmem %s43_s10, 256  ;;  %p369_p6 = scmp.lt.s32.totalorder %s43_s10, %s43_s10 }
  0x2b   :  { %p365_p5 = scmp.ne.s32.totalorder %s43_s10, %s364_s27  ;;  %p370_p7 = scmp.lt.s32.totalorder %s364_s27, %s364_s27 }
  0x2d   :  { %p371_p8 = por %p370_p7, %p369_p6 }
  0x2f   :  { %p372_p9 = pnand %p371_p8, %p365_p5 }
  0x31   :  { %375 = shalt.err (!%p372_p9)
}
  0x32   :  { %48 = dma.hbm_to_vmem [thread:$0]  %s512_s3, 256, %s43_s10, [#allocation6], %s405_s28, %s405_s28, %s406_s29  }
  0x33   :  { %398 = dma.done.wait [#allocation3], 128  }
  0x34   :  { %399 = vsyncadd [#allocation3], 4294967168 }
  0x35   :  { %400 = dma.done.wait [#allocation6], 512  }
  0x36   :  { %401 = vsyncadd [#allocation6], 4294966784  ;;  %v409_v0 = vmov 0.0|0.0   ;;  %vm410_vm0 = vmmov 0   ;;  %v411_v1 = vmov 0.0   ;;  %vm74_vm1 = vcmask 1041408  }
  0x37   :  { %288 = vmatprep.subr.bf16.mxu0 %v409_v0  ;;  %292 = vmatprep.subr.bf16.mxu1 %v409_v0  ;;  %v61_v2 = vld [vmem:[#allocation5] sm:$0xff]  ;;  %v62_v3 = vld [vmem:[#allocation5 + $0x8] sm:$0x3]  ;;  %vm412_vm2 = vmmov 1   ;;  %v60_v5 = vld [vmem:[#allocation2] sm:$0xff]  ;;  %vm70_vm4 = vcmask 80896  }
  0x38   :  { %278 = vmatprep.mubr.msk.f32.mxu0 %vm410_vm0, %v411_v1  ;;  %285 = vmatprep.mubr.msk.f32.mxu1 %vm410_vm0, %v411_v1  ;;  %vm290_vm3 = vmpackc.low %vm74_vm1, %vm412_vm2  ;;  %v289_v4 = vpack.c.bf16 %v62_v3, %v61_v2  ;;  %v149_v6 = vld [vmem:[#allocation7] sm:$0xff]  ;;  %v150_v7 = vld [vmem:[#allocation7 + $0x8] sm:$0x3] }
  0x39   :  { %v293_v8 = vpack.c.bf16 %v150_v7, %v149_v6  ;;  %v262_v9 = vld [vmem:[%s511_s2] ss:$0 sm:$0xff]  ;;  %s413_s2 = smov [#allocation8]  }
  0x3a   :  { %291 = vmatpush3.bf16.msk.msra.mxu0 %vm290_vm3, %v289_v4  ;;  %v265_v14 = vld [vmem:[%s513_s4] ss:$0 sm:$0xff]  ;;  %s252_s7 = sshll.u32 %s413_s2, 4  ;;  %s253_s7 = int_to_ptr.vmem [resolvable:$true] %s252_s7 }
  0x3b   :  { %295 = vmatpush3.bf16.msk.msra.mxu1 %vm290_vm3, %v293_v8  ;;  %s376_s4 = scalar_lea.vmem %s253_s7, 128  ;;  %p381_p11 = scmp.lt.s32.totalorder %s253_s7, %s253_s7 }
  0x3c   :  { %p377_p10 = scmp.ne.s32.totalorder %s253_s7, %s376_s4  ;;  %p382_p12 = scmp.lt.s32.totalorder %s376_s4, %s376_s4 }
  0x3d   :  { %279 = vmatmul.mubr.msk.f32.vlgmr.msra.gmra.mrb[0].mxu0 %vm70_vm4, %v60_v5 }
  0x3e   :  { %p383_p13 = por %p382_p12, %p381_p11 }
  0x40   :  { %p384_p0 = pnand %p383_p13, %p377_p10 }
 0x110   :  { %v144_v10 = vpop.f32.mrb[0].mxu0 }
 0x111   :  { %v145_v11 = vadd.f32 %v262_v9, %v144_v10  ;;  %v280_v12 = vpop.f32.mrb[1].mxu0 }
 0x113   :  { %v148_v13 = vmax.f32 %v145_v11, 0.0 }
 0x115   :  { %286 = vmatmul.mubr.msk.f32.vlgmr.msra.gmra.mrb[0].mxu1 %vm70_vm4, %v148_v13 }
 0x1e8   :  { %v230_v15 = vpop.f32.mrb[0].mxu1 }
 0x1e9   :  { %v231_v16 = vadd.f32 %v265_v14, %v230_v15  ;;  %v287_v17 = vpop.f32.mrb[1].mxu1 }
 0x1eb   :  { %v234_v18 = vsel %vm70_vm4, %v231_v16, -inf }
 0x1ec   :  { %235 = vmax.xlane.f32.xlu0 %v234_v18 }
 0x279   :  { %v236_v19 = vpop.xlane.xlu0 %235 }
 0x27a   :  { %v237_v20 = vsub.f32 %v231_v16, %v236_v19 }
 0x27c   :  { %v238_v21 = vmul.f32 1.442695, %v237_v20 }
 0x27e   :  { %306 = vpow2.f32 %v238_v21 }
 0x288   :  { %v307_v22 = vpop.eup %306 }
 0x289   :  { %v240_v23 = vsel %vm70_vm4, %v307_v22, 0.0 }
 0x28a   :  { %241 = vadd.xlane.f32.xlu0 %v240_v23 }
 0x317   :  { %v242_v24 = vpop.xlane.xlu0 %241 }
 0x318   :  { %308 = vrcp.f32 %v242_v24 }
 0x322   :  { %v309_v25 = vpop.eup %308 }
 0x323   :  { %v244_v26 = vmul.f32 %v309_v25, %v307_v22 }
 0x325   :  { %245 = vst.msk [vmem:[#allocation8] sm:$0xff] %vm70_vm4, %v244_v26 }
 0x326   :  { %387 = shalt.err (!%p384_p0)
}
 0x327   :  { %s388_s10 = scalar_lea.hbm %s514_s5, 128 }
 0x328   :  { %p389_p1 = scmp.ne.s32.totalorder %s514_s5, %s388_s10  ;;  %p392_p2 = scmp.lt.u32.totalorder %s388_s10, %s514_s5 }
 0x32a   :  { %p394_p3 = pnand %p392_p2, %p389_p1 }
 0x32c   :  { %397 = shalt.err (!%p394_p3)
}
 0x32d   :  { %255 = dma.vmem_to_hbm [thread:$0]  %s253_s7, 128, %s514_s5, [#allocation4]  }
 0x32e   :  { %402 = dma.done.wait [#allocation4], 128  }
 0x32f   :  { %403 = vsyncadd [#allocation4], 4294967168 }
 0x330   :  { %259 = vsyncpa [#allocation3], 1 }
 0x331   :  { %260 = vsyncpa [#allocation6], 1 }
 0x332   :  { %261 = vsyncpa [#allocation4], 1 }

</bundles_post_ra>
